<compile_context>
chip_gen: v6e
topology: v6e:2x2x1
jax: 0.10.0
libtpu: 0.0.40
codegen_flags: <defaults>
</compile_context>

<pallas_src>
import math
from functools import partial

import jax
import jax.numpy as jnp
from jax.experimental import pallas as pl
from jax.experimental.pallas import tpu as pltpu


def _mha_kernel(x_ref, w_qkv_ref, bq_ref, bv_ref, o_ref, *,
                batch, seq, num_heads, head_dim):
    """Single-invocation MHA.

    x_ref:     (B*S, D)        flattened tokens (batch folded into matmul rows)
    w_qkv_ref: (D, 3*H*Dh)     fused per-head Q/K/V weights, head-major columns,
                               1/sqrt(Dh) already folded into the Q slab
    bq_ref:    (1, H*Dh)       Q bias (scaled);  bk is dropped (softmax const)
    bv_ref:    (1, H*Dh)       V bias (added once after attn@v)
    o_ref:     (B*S, H*Dh)     concatenated head outputs, rounded to 4 decimals
    """
    HD = num_heads * head_dim

    x = x_ref[...]                                                 # (B*S, D)
    w = w_qkv_ref[...]                                             # (D, 3*HD)
    bq = bq_ref[...]                                               # (1, HD)
    bv = bv_ref[...]                                               # (1, HD)

    # One fused, lane-dense projection for Q/K/V of all heads and all batches.
    qkv = jnp.dot(x, w, preferred_element_type=jnp.float32)        # (B*S, 3*HD)

    q = qkv[:, :HD] + bq          # scale already folded into weights/bias
    k = qkv[:, HD:2 * HD]         # bk dropped: softmax row-constant
    v = qkv[:, 2 * HD:]

    # Head-batched attention: stack every (batch, head) tile on a leading
    # (untiled) axis -> two batched dot_generals + one batched softmax instead
    # of a scalar loop of 2*H tiny matmuls.
    def gather_tiles(t):  # (B*S, HD) -> (B*H, S, Dh)
        tiles = [t[b * seq:(b + 1) * seq, h * head_dim:(h + 1) * head_dim]
                 for b in range(batch) for h in range(num_heads)]
        return jnp.stack(tiles, axis=0)

    qh = gather_tiles(q)                                           # (B*H, S, Dh)
    kh = gather_tiles(k)
    vh = gather_tiles(v)

    # Scores: contract on the shared last dim (no explicit k transpose).
    s = jnp.einsum('nqd,nkd->nqk', qh, kh,
                   preferred_element_type=jnp.float32)             # (B*H, S, S)

    # Numerically-stable softmax along the last axis (exact reciprocal kept:
    # approx=True would perturb the 4-decimal rounding vs. the f32 reference).
    m = jnp.max(s, axis=-1, keepdims=True)
    p = jnp.exp(s - m)
    denom = jnp.sum(p, axis=-1, keepdims=True)
    attn = p * (1.0 / denom)

    o = jnp.einsum('nqk,nkd->nqd', attn, vh,
                   preferred_element_type=jnp.float32)             # (B*H, S, Dh)

    # Reassemble to (B*S, H*Dh): lane concat over heads, sublane concat over
    # batches, then ONE full-block store (lane-dense for non-toy HD).
    rows = [jnp.concatenate([o[b * num_heads + h] for h in range(num_heads)],
                            axis=-1)                               # (S, HD)
            for b in range(batch)]
    full = jnp.concatenate(rows, axis=0) + bv                      # (B*S, HD)

    # torch.round(..., decimals=4)
    o_ref[...] = jnp.round(full * 1e4) / 1e4


def pack_mha_params(wq, wk, wv, bq, bk, bv):
    """One-time parameter packing (hoisted out of the per-call path).

    wq/wk/wv: (H, D, Dh); bq/bk/bv: (H, 1, Dh).
    Returns w_qkv (D, 3*H*Dh), bq_all (1, H*Dh), bv_all (1, H*Dh).
    The 1/sqrt(Dh) score scale is folded into the Q weight columns and bq;
    bk is dropped (softmax is invariant to the per-row constant it adds).
    """
    H, D, Dh = wq.shape
    HD = H * Dh
    scale = 1.0 / math.sqrt(Dh)
    del bk

    def _stack(w):  # (H, D, Dh) -> (D, H*Dh), head-major column slabs
        return jnp.transpose(w, (1, 0, 2)).reshape(D, HD)

    w_qkv = jnp.concatenate([_stack(wq) * scale, _stack(wk), _stack(wv)],
                            axis=-1)                               # (D, 3*HD)
    bq_all = bq.reshape(1, HD) * scale
    bv_all = bv.reshape(1, HD)
    return w_qkv, bq_all, bv_all


def multi_head_attention(x, w_qkv, bq_all, bv_all, *, num_heads):
    """x: (B, S, D); packed params from pack_mha_params -> (B, S, H*Dh)."""
    B, S, D = x.shape
    HD = w_qkv.shape[1] // 3
    Dh = HD // num_heads

    x2 = x.reshape(B * S, D)          # contiguous, free: B folded into rows

    kernel = partial(_mha_kernel, batch=B, seq=S,
                     num_heads=num_heads, head_dim=Dh)

    out = pl.pallas_call(
        kernel,
        out_shape=jax.ShapeDtypeStruct((B * S, HD), jnp.float32),
        # No grid: single invocation, whole (tiny) operands resident in VMEM.
        in_specs=[
            pl.BlockSpec(memory_space=pltpu.MemorySpace.VMEM),     # x (B*S, D)
            pl.BlockSpec(memory_space=pltpu.MemorySpace.VMEM),     # w_qkv
            pl.BlockSpec(memory_space=pltpu.MemorySpace.VMEM),     # bq
            pl.BlockSpec(memory_space=pltpu.MemorySpace.VMEM),     # bv
        ],
        out_specs=pl.BlockSpec(memory_space=pltpu.MemorySpace.VMEM),
    )(x2, w_qkv, bq_all, bv_all)

    return out.reshape(B, S, HD)      # contiguous, free


def _reference(x, wq, wk, wv, bq, bk, bv):
    """Pure-JAX reference mirroring the PyTorch forward (bk kept, unscaled weights)."""
    H, _, Dh = wq.shape
    outs = []
    for h in range(H):
        q = x @ wq[h] + bq[h]
        k = x @ wk[h] + bk[h]
        v = x @ wv[h] + bv[h]
        s = (q @ jnp.swapaxes(k, -1, -2)) / math.sqrt(Dh)
        a = jax.nn.softmax(s, axis=-1)
        outs.append(a @ v)
    cat = jnp.concatenate(outs, axis=-1)
    return jnp.round(cat * 1e4) / 1e4


if __name__ == "__main__":
    B, S = 2, 8
    attention_dim, num_heads = 32, 4
    head_dim = attention_dim // num_heads

    key = jax.random.PRNGKey(0)
    kx, kq, kk, kv, kbq, kbk, kbv = jax.random.split(key, 7)

    # Deterministic synthetic parameters (one (D, Dh) projection per head).
    # TODO(synk): torch.manual_seed(0) nn.Linear default init not reproduced.
    x = jax.random.normal(kx, (B, S, attention_dim), dtype=jnp.float32)
    wq = 0.1 * jax.random.normal(kq, (num_heads, attention_dim, head_dim), jnp.float32)
    wk = 0.1 * jax.random.normal(kk, (num_heads, attention_dim, head_dim), jnp.float32)
    wv = 0.1 * jax.random.normal(kv, (num_heads, attention_dim, head_dim), jnp.float32)
    bq = 0.1 * jax.random.normal(kbq, (num_heads, 1, head_dim), jnp.float32)
    bk = 0.1 * jax.random.normal(kbk, (num_heads, 1, head_dim), jnp.float32)
    bv = 0.1 * jax.random.normal(kbv, (num_heads, 1, head_dim), jnp.float32)

    # One-time packing (not part of the per-forward path).
    w_qkv, bq_all, bv_all = pack_mha_params(wq, wk, wv, bq, bk, bv)

    out = multi_head_attention(x, w_qkv, bq_all, bv_all, num_heads=num_heads)
    out = jax.block_until_ready(out)

    ref = _reference(x, wq, wk, wv, bq, bk, bv)
    assert out.shape == (B, S, attention_dim), out.shape
    assert jnp.allclose(out, ref, atol=2e-4), float(jnp.max(jnp.abs(out - ref)))

    print("KERNEL_OK")
</pallas_src>

<mosaic_0001>
module attributes {stable_mosaic.version = 11 : i64} {
  func.func @_mha_kernel(%arg0: memref<16x32xf32, #tpu.memory_space<vmem>>, %arg1: memref<32x96xf32, #tpu.memory_space<vmem>>, %arg2: memref<1x32xf32, #tpu.memory_space<vmem>>, %arg3: memref<1x32xf32, #tpu.memory_space<vmem>>, %arg4: memref<16x32xf32, #tpu.memory_space<vmem>>) attributes {dimension_semantics = [], scalar_prefetch = 0 : i64, scratch_operands = 0 : i64, tpu.core_type = #tpu.core_type<tc>} {
    %c0 = arith.constant 0 : index
    %c0_0 = arith.constant 0 : index
    %0 = vector.load %arg0[%c0, %c0_0] : memref<16x32xf32, #tpu.memory_space<vmem>>, vector<16x32xf32>
    %c0_1 = arith.constant 0 : index
    %c0_2 = arith.constant 0 : index
    %1 = vector.load %arg1[%c0_1, %c0_2] : memref<32x96xf32, #tpu.memory_space<vmem>>, vector<32x96xf32>
    %c0_3 = arith.constant 0 : index
    %c0_4 = arith.constant 0 : index
    %2 = vector.load %arg2[%c0_3, %c0_4] : memref<1x32xf32, #tpu.memory_space<vmem>>, vector<1x32xf32>
    %c0_5 = arith.constant 0 : index
    %c0_6 = arith.constant 0 : index
    %3 = vector.load %arg3[%c0_5, %c0_6] : memref<1x32xf32, #tpu.memory_space<vmem>>, vector<1x32xf32>
    %cst = arith.constant dense<0.000000e+00> : vector<16x96xf32>
    %4 = tpu.matmul %0, %1, %cst {dimension_numbers = #tpu.dot_dimension_numbers<[1], [0], [0], [1], [0, 0, 1, 1], [], []>} : vector<16x32xf32>, vector<32x96xf32>, vector<16x96xf32> -> vector<16x96xf32>
    %5 = vector.extract_strided_slice %4 {offsets = [0, 0], sizes = [16, 32], strides = [1, 1]} : vector<16x96xf32> to vector<16x32xf32>
    %6 = vector.broadcast %2 : vector<1x32xf32> to vector<16x32xf32>
    %7 = arith.addf %5, %6 : vector<16x32xf32>
    %8 = vector.extract_strided_slice %4 {offsets = [0, 32], sizes = [16, 32], strides = [1, 1]} : vector<16x96xf32> to vector<16x32xf32>
    %9 = vector.extract_strided_slice %4 {offsets = [0, 64], sizes = [16, 32], strides = [1, 1]} : vector<16x96xf32> to vector<16x32xf32>
    %10 = vector.extract_strided_slice %7 {offsets = [0, 0], sizes = [8, 8], strides = [1, 1]} : vector<16x32xf32> to vector<8x8xf32>
    %11 = vector.extract_strided_slice %7 {offsets = [0, 8], sizes = [8, 8], strides = [1, 1]} : vector<16x32xf32> to vector<8x8xf32>
    %12 = vector.extract_strided_slice %7 {offsets = [0, 16], sizes = [8, 8], strides = [1, 1]} : vector<16x32xf32> to vector<8x8xf32>
    %13 = vector.extract_strided_slice %7 {offsets = [0, 24], sizes = [8, 8], strides = [1, 1]} : vector<16x32xf32> to vector<8x8xf32>
    %14 = vector.extract_strided_slice %7 {offsets = [8, 0], sizes = [8, 8], strides = [1, 1]} : vector<16x32xf32> to vector<8x8xf32>
    %15 = vector.extract_strided_slice %7 {offsets = [8, 8], sizes = [8, 8], strides = [1, 1]} : vector<16x32xf32> to vector<8x8xf32>
    %16 = vector.extract_strided_slice %7 {offsets = [8, 16], sizes = [8, 8], strides = [1, 1]} : vector<16x32xf32> to vector<8x8xf32>
    %17 = vector.extract_strided_slice %7 {offsets = [8, 24], sizes = [8, 8], strides = [1, 1]} : vector<16x32xf32> to vector<8x8xf32>
    %18 = vector.shape_cast %10 : vector<8x8xf32> to vector<1x8x8xf32>
    %19 = vector.shape_cast %11 : vector<8x8xf32> to vector<1x8x8xf32>
    %20 = vector.shape_cast %12 : vector<8x8xf32> to vector<1x8x8xf32>
    %21 = vector.shape_cast %13 : vector<8x8xf32> to vector<1x8x8xf32>
    %22 = vector.shape_cast %14 : vector<8x8xf32> to vector<1x8x8xf32>
    %23 = vector.shape_cast %15 : vector<8x8xf32> to vector<1x8x8xf32>
    %24 = vector.shape_cast %16 : vector<8x8xf32> to vector<1x8x8xf32>
    %25 = vector.shape_cast %17 : vector<8x8xf32> to vector<1x8x8xf32>
    %26 = tpu.concatenate %18, %19, %20, %21, %22, %23, %24, %25 in 0 : vector<1x8x8xf32>, vector<1x8x8xf32>, vector<1x8x8xf32>, vector<1x8x8xf32>, vector<1x8x8xf32>, vector<1x8x8xf32>, vector<1x8x8xf32>, vector<1x8x8xf32> -> vector<8x8x8xf32>
    %27 = vector.extract_strided_slice %8 {offsets = [0, 0], sizes = [8, 8], strides = [1, 1]} : vector<16x32xf32> to vector<8x8xf32>
    %28 = vector.extract_strided_slice %8 {offsets = [0, 8], sizes = [8, 8], strides = [1, 1]} : vector<16x32xf32> to vector<8x8xf32>
    %29 = vector.extract_strided_slice %8 {offsets = [0, 16], sizes = [8, 8], strides = [1, 1]} : vector<16x32xf32> to vector<8x8xf32>
    %30 = vector.extract_strided_slice %8 {offsets = [0, 24], sizes = [8, 8], strides = [1, 1]} : vector<16x32xf32> to vector<8x8xf32>
    %31 = vector.extract_strided_slice %8 {offsets = [8, 0], sizes = [8, 8], strides = [1, 1]} : vector<16x32xf32> to vector<8x8xf32>
    %32 = vector.extract_strided_slice %8 {offsets = [8, 8], sizes = [8, 8], strides = [1, 1]} : vector<16x32xf32> to vector<8x8xf32>
    %33 = vector.extract_strided_slice %8 {offsets = [8, 16], sizes = [8, 8], strides = [1, 1]} : vector<16x32xf32> to vector<8x8xf32>
    %34 = vector.extract_strided_slice %8 {offsets = [8, 24], sizes = [8, 8], strides = [1, 1]} : vector<16x32xf32> to vector<8x8xf32>
    %35 = vector.shape_cast %27 : vector<8x8xf32> to vector<1x8x8xf32>
    %36 = vector.shape_cast %28 : vector<8x8xf32> to vector<1x8x8xf32>
    %37 = vector.shape_cast %29 : vector<8x8xf32> to vector<1x8x8xf32>
    %38 = vector.shape_cast %30 : vector<8x8xf32> to vector<1x8x8xf32>
    %39 = vector.shape_cast %31 : vector<8x8xf32> to vector<1x8x8xf32>
    %40 = vector.shape_cast %32 : vector<8x8xf32> to vector<1x8x8xf32>
    %41 = vector.shape_cast %33 : vector<8x8xf32> to vector<1x8x8xf32>
    %42 = vector.shape_cast %34 : vector<8x8xf32> to vector<1x8x8xf32>
    %43 = tpu.concatenate %35, %36, %37, %38, %39, %40, %41, %42 in 0 : vector<1x8x8xf32>, vector<1x8x8xf32>, vector<1x8x8xf32>, vector<1x8x8xf32>, vector<1x8x8xf32>, vector<1x8x8xf32>, vector<1x8x8xf32>, vector<1x8x8xf32> -> vector<8x8x8xf32>
    %44 = vector.extract_strided_slice %9 {offsets = [0, 0], sizes = [8, 8], strides = [1, 1]} : vector<16x32xf32> to vector<8x8xf32>
    %45 = vector.extract_strided_slice %9 {offsets = [0, 8], sizes = [8, 8], strides = [1, 1]} : vector<16x32xf32> to vector<8x8xf32>
    %46 = vector.extract_strided_slice %9 {offsets = [0, 16], sizes = [8, 8], strides = [1, 1]} : vector<16x32xf32> to vector<8x8xf32>
    %47 = vector.extract_strided_slice %9 {offsets = [0, 24], sizes = [8, 8], strides = [1, 1]} : vector<16x32xf32> to vector<8x8xf32>
    %48 = vector.extract_strided_slice %9 {offsets = [8, 0], sizes = [8, 8], strides = [1, 1]} : vector<16x32xf32> to vector<8x8xf32>
    %49 = vector.extract_strided_slice %9 {offsets = [8, 8], sizes = [8, 8], strides = [1, 1]} : vector<16x32xf32> to vector<8x8xf32>
    %50 = vector.extract_strided_slice %9 {offsets = [8, 16], sizes = [8, 8], strides = [1, 1]} : vector<16x32xf32> to vector<8x8xf32>
    %51 = vector.extract_strided_slice %9 {offsets = [8, 24], sizes = [8, 8], strides = [1, 1]} : vector<16x32xf32> to vector<8x8xf32>
    %52 = vector.shape_cast %44 : vector<8x8xf32> to vector<1x8x8xf32>
    %53 = vector.shape_cast %45 : vector<8x8xf32> to vector<1x8x8xf32>
    %54 = vector.shape_cast %46 : vector<8x8xf32> to vector<1x8x8xf32>
    %55 = vector.shape_cast %47 : vector<8x8xf32> to vector<1x8x8xf32>
    %56 = vector.shape_cast %48 : vector<8x8xf32> to vector<1x8x8xf32>
    %57 = vector.shape_cast %49 : vector<8x8xf32> to vector<1x8x8xf32>
    %58 = vector.shape_cast %50 : vector<8x8xf32> to vector<1x8x8xf32>
    %59 = vector.shape_cast %51 : vector<8x8xf32> to vector<1x8x8xf32>
    %60 = tpu.concatenate %52, %53, %54, %55, %56, %57, %58, %59 in 0 : vector<1x8x8xf32>, vector<1x8x8xf32>, vector<1x8x8xf32>, vector<1x8x8xf32>, vector<1x8x8xf32>, vector<1x8x8xf32>, vector<1x8x8xf32>, vector<1x8x8xf32> -> vector<8x8x8xf32>
    "tpu.trace_start"() <{level = 10 : i32, message = "nqd,nkd->nqk"}> : () -> ()
    %cst_7 = arith.constant dense<0.000000e+00> : vector<8x8x8xf32>
    %61 = tpu.matmul %26, %43, %cst_7 {dimension_numbers = #tpu.dot_dimension_numbers<[2], [2], [1], [1], [0, 0, 0, 1, 1, 1], [0], [0]>} : vector<8x8x8xf32>, vector<8x8x8xf32>, vector<8x8x8xf32> -> vector<8x8x8xf32>
    "tpu.trace_stop"() : () -> ()
    %cst_8 = arith.constant dense<0xFF800000> : vector<8x8xf32>
    %62 = vector.multi_reduction <maximumf>, %61, %cst_8 [2] : vector<8x8x8xf32> to vector<8x8xf32>
    %63 = vector.shape_cast %62 : vector<8x8xf32> to vector<8x8x1xf32>
    %64 = vector.broadcast %63 : vector<8x8x1xf32> to vector<8x8x8xf32>
    %65 = arith.subf %61, %64 : vector<8x8x8xf32>
    %66 = math.exp %65 : vector<8x8x8xf32>
    %cst_9 = arith.constant dense<0.000000e+00> : vector<8x8xf32>
    %67 = vector.multi_reduction <add>, %66, %cst_9 [2] : vector<8x8x8xf32> to vector<8x8xf32>
    %68 = vector.shape_cast %67 : vector<8x8xf32> to vector<8x8x1xf32>
    %cst_10 = arith.constant 1.000000e+00 : f32
    %69 = vector.broadcast %cst_10 : f32 to vector<8x8x1xf32>
    %70 = arith.divf %69, %68 : vector<8x8x1xf32>
    %71 = vector.broadcast %70 : vector<8x8x1xf32> to vector<8x8x8xf32>
    %72 = arith.mulf %66, %71 : vector<8x8x8xf32>
    "tpu.trace_start"() <{level = 10 : i32, message = "nqk,nkd->nqd"}> : () -> ()
    %cst_11 = arith.constant dense<0.000000e+00> : vector<8x8x8xf32>
    %73 = tpu.matmul %72, %60, %cst_11 {dimension_numbers = #tpu.dot_dimension_numbers<[2], [1], [1], [2], [0, 0, 0, 1, 1, 2], [0], [0]>} : vector<8x8x8xf32>, vector<8x8x8xf32>, vector<8x8x8xf32> -> vector<8x8x8xf32>
    "tpu.trace_stop"() : () -> ()
    %74 = vector.extract_strided_slice %73 {offsets = [0, 0, 0], sizes = [1, 8, 8], strides = [1, 1, 1]} : vector<8x8x8xf32> to vector<1x8x8xf32>
    %75 = vector.shape_cast %74 : vector<1x8x8xf32> to vector<8x8xf32>
    %76 = vector.extract_strided_slice %73 {offsets = [1, 0, 0], sizes = [1, 8, 8], strides = [1, 1, 1]} : vector<8x8x8xf32> to vector<1x8x8xf32>
    %77 = vector.shape_cast %76 : vector<1x8x8xf32> to vector<8x8xf32>
    %78 = vector.extract_strided_slice %73 {offsets = [2, 0, 0], sizes = [1, 8, 8], strides = [1, 1, 1]} : vector<8x8x8xf32> to vector<1x8x8xf32>
    %79 = vector.shape_cast %78 : vector<1x8x8xf32> to vector<8x8xf32>
    %80 = vector.extract_strided_slice %73 {offsets = [3, 0, 0], sizes = [1, 8, 8], strides = [1, 1, 1]} : vector<8x8x8xf32> to vector<1x8x8xf32>
    %81 = vector.shape_cast %80 : vector<1x8x8xf32> to vector<8x8xf32>
    %82 = tpu.concatenate %75, %77, %79, %81 in 1 : vector<8x8xf32>, vector<8x8xf32>, vector<8x8xf32>, vector<8x8xf32> -> vector<8x32xf32>
    %83 = vector.extract_strided_slice %73 {offsets = [4, 0, 0], sizes = [1, 8, 8], strides = [1, 1, 1]} : vector<8x8x8xf32> to vector<1x8x8xf32>
    %84 = vector.shape_cast %83 : vector<1x8x8xf32> to vector<8x8xf32>
    %85 = vector.extract_strided_slice %73 {offsets = [5, 0, 0], sizes = [1, 8, 8], strides = [1, 1, 1]} : vector<8x8x8xf32> to vector<1x8x8xf32>
    %86 = vector.shape_cast %85 : vector<1x8x8xf32> to vector<8x8xf32>
    %87 = vector.extract_strided_slice %73 {offsets = [6, 0, 0], sizes = [1, 8, 8], strides = [1, 1, 1]} : vector<8x8x8xf32> to vector<1x8x8xf32>
    %88 = vector.shape_cast %87 : vector<1x8x8xf32> to vector<8x8xf32>
    %89 = vector.extract_strided_slice %73 {offsets = [7, 0, 0], sizes = [1, 8, 8], strides = [1, 1, 1]} : vector<8x8x8xf32> to vector<1x8x8xf32>
    %90 = vector.shape_cast %89 : vector<1x8x8xf32> to vector<8x8xf32>
    %91 = tpu.concatenate %84, %86, %88, %90 in 1 : vector<8x8xf32>, vector<8x8xf32>, vector<8x8xf32>, vector<8x8xf32> -> vector<8x32xf32>
    %92 = tpu.concatenate %82, %91 in 0 : vector<8x32xf32>, vector<8x32xf32> -> vector<16x32xf32>
    %93 = vector.broadcast %3 : vector<1x32xf32> to vector<16x32xf32>
    %94 = arith.addf %92, %93 : vector<16x32xf32>
    %cst_12 = arith.constant 1.000000e+04 : f32
    %95 = vector.broadcast %cst_12 : f32 to vector<16x32xf32>
    %96 = arith.mulf %94, %95 : vector<16x32xf32>
    %97 = math.roundeven %96 : vector<16x32xf32>
    %cst_13 = arith.constant 1.000000e+04 : f32
    %98 = vector.broadcast %cst_13 : f32 to vector<16x32xf32>
    %99 = arith.divf %97, %98 : vector<16x32xf32>
    %c0_14 = arith.constant 0 : index
    %c0_15 = arith.constant 0 : index
    %100 = vector.load %arg4[%c0_14, %c0_15] : memref<16x32xf32, #tpu.memory_space<vmem>>, vector<16x32xf32>
    tpu.vector_store %arg4[%c0_14, %c0_15], %99 {strides = array<i32>} : memref<16x32xf32, #tpu.memory_space<vmem>>, vector<16x32xf32>,
    return
  }
}

</mosaic_0001>

<bundles_post_ra>
// kernel: tpu_custom_call.1
= control target key start
LH: loop header
LB: loop body
LE: loop exit
PB: predicated region body
PF: predicated region fallthrough
CT: control target
= control target key end

     0   :  { %9 = vsyncpa [#allocation3], 0  ;;  %s2064_s0 = inlined_call_operand.hbm [shape: f32[16,32], index: 0, kind: input, shape index: {}]   ;;  %s2065_s1 = inlined_call_operand.hbm [shape: f32[32,96], index: 1, kind: input, shape index: {}]   ;;  %s2066_s2 = inlined_call_operand.vmem [shape: f32[1,32], index: 2, kind: input, shape index: {}]   ;;  %s2067_s3 = inlined_call_operand.vmem [shape: f32[1,32], index: 3, kind: input, shape index: {}]   ;;  %s2068_s4 = inlined_call_operand.hbm [shape: f32[16,32], index: 4, kind: output, shape index: {}]  }
   0x1   :  { %10 = vsyncpa [#allocation6], 0 }
   0x2   :  { %11 = vsyncpa [#allocation4], 0  ;;  %s1837_s15 = smov [#allocation2]  }
   0x3   :  { %s17_s16 = sshll.u32 %s1837_s15, 4  ;;  %s18_s16 = int_to_ptr.vmem [resolvable:$true] %s17_s16 }
   0x4   :  { %s1779_s17 = scalar_lea.vmem %s18_s16, 256  ;;  %p1784_p1 = scmp.lt.s32.totalorder %s18_s16, %s18_s16 }
   0x5   :  { %p1780_p0 = scmp.ne.s32.totalorder %s18_s16, %s1779_s17  ;;  %p1785_p2 = scmp.lt.s32.totalorder %s1779_s17, %s1779_s17 }
   0x7   :  { %p1786_p3 = por %p1785_p2, %p1784_p1 }
   0x9   :  { %p1787_p4 = pnand %p1786_p3, %p1780_p0 }
   0xb   :  { %1790 = shalt.err (!%p1787_p4)
}
   0xc   :  { %s1838_s18 = smov 128   ;;  %s1839_s19 = smov 8  }
   0xd   :  { %23 = dma.hbm_to_vmem [thread:$0]  %s2064_s0, 256, %s18_s16, [#allocation3], %s1838_s18, %s1838_s18, %s1839_s19  }
   0xe   :  { %s1840_s22 = smov [#allocation5]  }
   0xf   :  { %s29_s23 = sshll.u32 %s1840_s22, 4  ;;  %s30_s23 = int_to_ptr.vmem [resolvable:$true] %s29_s23 }
  0x10   :  { %s1799_s24 = scalar_lea.vmem %s30_s23, 512  ;;  %p1804_p6 = scmp.lt.s32.totalorder %s30_s23, %s30_s23 }
  0x11   :  { %p1800_p5 = scmp.ne.s32.totalorder %s30_s23, %s1799_s24  ;;  %p1805_p7 = scmp.lt.s32.totalorder %s1799_s24, %s1799_s24 }
  0x13   :  { %p1806_p8 = por %p1805_p7, %p1804_p6 }
  0x15   :  { %p1807_p9 = pnand %p1806_p8, %p1800_p5 }
  0x17   :  { %1810 = shalt.err (!%p1807_p9)
}
  0x18   :  { %35 = dma.hbm_to_vmem [thread:$0]  %s2065_s1, 512, %s30_s23, [#allocation6], %s1838_s18, %s1838_s18, %s1839_s19  }
  0x19   :  { %1831 = dma.done.wait [#allocation3], 256  }
  0x1a   :  { %1832 = vsyncadd [#allocation3], 4294967040 }
  0x1b   :  { %1833 = dma.done.wait [#allocation6], 512  }
  0x1c   :  { %1834 = vsyncadd [#allocation6], 4294966784  ;;  %vm54_vm0 = vcmask 261120   ;;  %v51_v0 = vld [vmem:[#allocation5 + $0x18] sm:$0xff]  ;;  %v50_v1 = vld [vmem:[#allocation5 + $0x10] sm:$0xff]  ;;  %v1841_v6 = vmov 0.0  }
  0x1d   :  { %1618 = vmatprep.subr.mxu0 %v51_v0  ;;  %v46_v2 = vld [vmem:[#allocation2] sm:$0xff]  ;;  %v49_v3 = vld [vmem:[#allocation5 + $0x8] sm:$0xff]  ;;  %v48_v4 = vld [vmem:[#allocation5] sm:$0xff]  ;;  %1629 = vmatprep.subr.mxu1 %v1841_v6  ;;  %s1842_s0 = smov 104   ;;  %s1843_s1 = smov 120   ;;  %vm1844_vm1 = vmmov 0  }
  0x1e   :  { %1619 = vmatpush3.msra.mxu0 %v51_v0  ;;  %1626 = vmatprep.mubr.msk.f32.mxu0 %vm54_vm0, %v46_v2  ;;  %v47_v5 = vld [vmem:[#allocation2 + $0x8] sm:$0xff]  ;;  %s1845_s27 = smov 112   ;;  %s1846_s28 = smov 96   ;;  %v1554_v9 = vld [vmem:[%s2066_s2] ss:$0 sm:$0xff]  ;;  %vm174_vm2 = vcmask 64512  }
  0x1f   :  { %1620 = vmatprep.subr.mxu0 %v50_v1  ;;  %1631 = vmatprep.mubr.msk.f32.mxu1 %vm1844_vm1, %v1841_v6  ;;  %s1847_s2 = smov 64   ;;  %s1848_s5 = smov 16   ;;  %vm1498_vm3 = vcmask 130048   ;;  %vm1500_vm4 = vcmask 195584  }
  0x20   :  { %1621 = vmatpush3.msra.mxu0 %v50_v1  ;;  %s1849_s6 = smov 24  }
  0x21   :  { %1622 = vmatprep.subr.mxu0 %v49_v3 }
  0x22   :  { %1623 = vmatpush3.msra.mxu0 %v49_v3 }
  0x23   :  { %1624 = vmatprep.subr.mxu0 %v48_v4 }
  0x24   :  { %1625 = vmatpush3.msra.mxu0 %v48_v4 }
  0x25   :  { %1627 = vmatmul.mubr.msk.f32.vlgmr.msra.gmra.mxu0 %vm54_vm0, %v47_v5  ;;  %1639 = vmatprep.subr.mxu0 %v1841_v6 }
  0x26   :  { %1641 = vmatprep.mubr.msk.f32.mxu0 %vm1844_vm1, %v1841_v6 }
  0xe5   :  { %v1892_v7 = vpop.f32.mrf.mxu0 }
  0xe6   :  { %v143_v15 = vadd.f32 %v1892_v7, %v1554_v9 }
  0xe7   :  { %v1894_v8 = vpop.f32.mrf.mxu0 }
  0xe8   :  { %163 = vrot.lane.b32.xlu1 %v1894_v8, %s1842_s0  ;;  %159 = vrot.lane.b32.xlu0 %v1894_v8, %s1843_s1  ;;  %v142_v10 = vadd.f32 %v1554_v9, %v1894_v8 }
  0xec   :  { %166 = vrot.lane.b32.xlu1 %v1892_v7, %s1843_s1  ;;  %161 = vrot.lane.b32.xlu0 %v1894_v8, %s1845_s27 }
  0xf0   :  { %170 = vrot.lane.b32.xlu1 %v1892_v7, %s1842_s0  ;;  %168 = vrot.lane.b32.xlu0 %v1892_v7, %s1845_s27 }
  0xf4   :  { %477 = vrot.lane.b32.xlu1 %v1892_v7, %s1846_s28  ;;  %172 = vrot.lane.b32.xlu0 %v1894_v8, %s1846_s28 }
  0xf8   :  { %147 = vrot.lane.b32.xlu1 %v142_v10, %s1845_s27  ;;  %145 = vrot.lane.b32.xlu0 %v142_v10, %s1843_s1 }
  0xfc   :  { %149 = vrot.lane.b32.xlu0 %v142_v10, %s1842_s0 }
 0x15a   :  { %v1915_v11 = vpop.permute.xlu1 %163  ;;  %v1917_v12 = vpop.permute.xlu0 %159 }
 0x15b   :  { %249 = vrot.lane.b32.xlu1 %v1917_v12, %s1846_s28  ;;  %401 = vrot.lane.b32.xlu0 %v1915_v11, %s1846_s28 }
 0x15e   :  { %v1921_v13 = vpop.permute.xlu1 %166  ;;  %v1923_v14 = vpop.permute.xlu0 %161 }
 0x15f   :  { %325 = vrot.lane.b32.xlu1 %v1923_v14, %s1846_s28  ;;  %553 = vrot.lane.b32.xlu0 %v1921_v13, %s1846_s28 }
 0x162   :  { %v1928_v16 = vpop.permute.xlu0 %168  ;;  %v1931_v17 = vpop.permute.xlu1 %170 }
 0x163   :  { %152 = vrot.lane.b32.xlu1 %v143_v15, %s1843_s1  ;;  %629 = vrot.lane.b32.xlu0 %v1928_v16, %s1846_s28 }
 0x166   :  { %v173_v18 = vpop.permute.xlu0 %172  ;;  %v478_v19 = vpop.permute.xlu1 %477 }
 0x167   :  { %1630 = vmatpush3.xpose.msk.msra.mxu1 %vm174_vm2, %v173_v18  ;;  %705 = vrot.lane.b32.xlu1 %v1931_v17, %s1846_s28 }
 0x168   :  { %154 = vrot.lane.b32.xlu0 %v143_v15, %s1845_s27  ;;  %1634 = vmatprep.subr.mxu1 %v1841_v6 }
 0x16a   :  { %1632 = vmatmul.mubr.msk.f32.vlgmr.msra.gmra.mxu1 %vm174_vm2, %v142_v10  ;;  %v146_v20 = vpop.permute.xlu0 %145  ;;  %v148_v21 = vpop.permute.xlu1 %147 }
 0x16b   :  { %156 = vrot.lane.b32.xlu1 %v143_v15, %s1842_s0  ;;  %1636 = vmatprep.mubr.msk.f32.mxu1 %vm1844_vm1, %v1841_v6 }
 0x16e   :  { %v150_v22 = vpop.permute.xlu0 %149 }
 0x1cd   :  { %v250_v23 = vpop.permute.xlu1 %249  ;;  %v402_v24 = vpop.permute.xlu0 %401 }
 0x1ce   :  { %1635 = vmatpush3.xpose.msk.msra.mxu1 %vm174_vm2, %v250_v23 }
 0x1cf   :  { %1644 = vmatprep.subr.mxu1 %v1841_v6 }
 0x1d1   :  { %v326_v25 = vpop.permute.xlu1 %325  ;;  %v554_v26 = vpop.permute.xlu0 %553  ;;  %1637 = vmatmul.mubr.msk.f32.vlgmr.msra.gmra.mxu1 %vm174_vm2, %v146_v20 }
 0x1d2   :  { %1640 = vmatpush3.xpose.msk.msra.mxu0 %vm174_vm2, %v326_v25  ;;  %1645 = vmatpush3.xpose.msk.msra.mxu1 %vm174_vm2, %v402_v24 }
 0x1d3   :  { %1646 = vmatprep.mubr.msk.f32.mxu1 %vm1844_vm1, %v1841_v6  ;;  %1649 = vmatprep.subr.mxu0 %v1841_v6 }
 0x1d4   :  { %1654 = vmatprep.subr.mxu1 %v1841_v6 }
 0x1d5   :  { %1642 = vmatmul.mubr.msk.f32.vlgmr.msra.gmra.mxu0 %vm174_vm2, %v148_v21  ;;  %v153_v27 = vpop.permute.xlu1 %152  ;;  %1647 = vmatmul.mubr.msk.f32.vlgmr.msra.gmra.mxu1 %vm174_vm2, %v150_v22  ;;  %v630_v28 = vpop.permute.xlu0 %629 }
 0x1d6   :  { %1650 = vmatpush3.xpose.msk.msra.mxu0 %vm174_vm2, %v478_v19  ;;  %1655 = vmatpush3.xpose.msk.msra.mxu1 %vm174_vm2, %v554_v26 }
 0x1d7   :  { %1651 = vmatprep.mubr.msk.f32.mxu0 %vm1844_vm1, %v1841_v6  ;;  %1656 = vmatprep.mubr.msk.f32.mxu1 %vm1844_vm1, %v1841_v6 }
 0x1d8   :  { %1659 = vmatprep.subr.mxu0 %v1841_v6  ;;  %1664 = vmatprep.subr.mxu1 %v1841_v6 }
 0x1d9   :  { %1652 = vmatmul.mubr.msk.f32.vlgmr.msra.gmra.mxu0 %vm174_vm2, %v143_v15  ;;  %v706_v29 = vpop.permute.xlu1 %705  ;;  %1657 = vmatmul.mubr.msk.f32.vlgmr.msra.gmra.mxu1 %vm174_vm2, %v153_v27 }
 0x1da   :  { %1660 = vmatpush3.xpose.msk.msra.mxu0 %vm174_vm2, %v630_v28  ;;  %1665 = vmatpush3.xpose.msk.msra.mxu1 %vm174_vm2, %v706_v29  ;;  %v155_v30 = vpop.permute.xlu0 %154 }
 0x1db   :  { %1661 = vmatprep.mubr.msk.f32.mxu0 %vm1844_vm1, %v1841_v6  ;;  %1666 = vmatprep.mubr.msk.f32.mxu1 %vm1844_vm1, %v1841_v6 }
 0x1dc   :  { %1669 = vmatprep.subr.mxu0 %v1841_v6  ;;  %1674 = vmatprep.subr.mxu1 %v1841_v6 }
 0x1dd   :  { %v157_v31 = vpop.permute.xlu1 %156  ;;  %1662 = vmatmul.mubr.msk.f32.vlgmr.msra.gmra.mxu0 %vm174_vm2, %v155_v30 }
 0x1de   :  { %1667 = vmatmul.mubr.msk.f32.vlgmr.msra.gmra.mxu1 %vm174_vm2, %v157_v31  ;;  %1671 = vmatprep.mubr.msk.f32.mxu0 %vm1844_vm1, %v1841_v6 }
 0x1df   :  { %1676 = vmatprep.mubr.msk.f32.mxu1 %vm1844_vm1, %v1841_v6 }
 0x22a   :  { %v245_v32 = vpop.f32.mrf.mxu1 }
 0x22b   :  { %v781_v33 = vsel %vm174_vm2, %v245_v32, -inf }
 0x22c   :  { %782 = vmax.xlane.f32.xlu0 %v781_v33  ;;  %v1633_v34 = vpop.f32.mrf.mxu1 }
 0x291   :  { %v321_v35 = vpop.f32.mrf.mxu1 }
 0x292   :  { %v784_v36 = vsel %vm174_vm2, %v321_v35, -inf }
 0x293   :  { %785 = vmax.xlane.f32.xlu1 %v784_v36  ;;  %v1638_v37 = vpop.f32.mrf.mxu1 }
 0x295   :  { %v397_v38 = vpop.f32.mrf.mxu0  ;;  %v473_v39 = vpop.f32.mrf.mxu1 }
 0x296   :  { %v787_v40 = vsel %vm174_vm2, %v397_v38, -inf  ;;  %v790_v46 = vsel %vm174_vm2, %v473_v39, -inf }
 0x297   :  { %v1643_v41 = vpop.f32.mrf.mxu0  ;;  %788 = vmax.xlane.f32.xlu0 %v787_v40  ;;  %v1648_v42 = vpop.f32.mrf.mxu1 }
 0x299   :  { %v549_v43 = vpop.f32.mrf.mxu0  ;;  %v625_v44 = vpop.f32.mrf.mxu1 }
 0x29a   :  { %v793_v45 = vsel %vm174_vm2, %v549_v43, -inf  ;;  %v796_v52 = vsel %vm174_vm2, %v625_v44, -inf }
 0x29b   :  { %v1653_v47 = vpop.f32.mrf.mxu0  ;;  %794 = vmax.xlane.f32.xlu1 %v793_v45  ;;  %791 = vmax.xlane.f32.xlu0 %v790_v46  ;;  %v1658_v48 = vpop.f32.mrf.mxu1 }
 0x29d   :  { %v701_v49 = vpop.f32.mrf.mxu0 }
 0x29e   :  { %v777_v50 = vpop.f32.mrf.mxu1  ;;  %v799_v51 = vsel %vm174_vm2, %v701_v49, -inf }
 0x29f   :  { %v1663_v53 = vpop.f32.mrf.mxu0  ;;  %800 = vmax.xlane.f32.xlu1 %v799_v51  ;;  %797 = vmax.xlane.f32.xlu0 %v796_v52  ;;  %v802_v55 = vsel %vm174_vm2, %v777_v50, -inf }
 0x2a0   :  { %v1668_v54 = vpop.f32.mrf.mxu1 }
 0x2a3   :  { %803 = vmax.xlane.f32.xlu0 %v802_v55 }
 0x2b0   :  { %877 = vrot.lane.b32.xlu1 %v1894_v8, %s1847_s2 }
 0x2b4   :  { %1029 = vrot.lane.b32.xlu1 %v1923_v14, %s1847_s2 }
 0x2b5   :  { %v783_v56 = vpop.xlane.xlu0 %782 }
 0x2b6   :  { %v805_v57 = vsub.f32 %v245_v32, %v783_v56 }
 0x2b8   :  { %1105 = vrot.lane.b32.xlu1 %v1915_v11, %s1847_s2  ;;  %v813_v58 = vmul.f32 1.442695, %v805_v57 }
 0x2b9   :  { %953 = vrot.lane.b32.xlu0 %v1917_v12, %s1847_s2 }
 0x2ba   :  { %1739 = vpow2.f32 %v813_v58 }
 0x2bc   :  { %1257 = vrot.lane.b32.xlu1 %v1921_v13, %s1847_s2 }
 0x2bd   :  { %1181 = vrot.lane.b32.xlu0 %v1892_v7, %s1847_s2 }
 0x2c7   :  { %v1995_v59 = vpop.eup %1739 }
 0x2c8   :  { %v829_v60 = vsel %vm174_vm2, %v1995_v59, 0.0 }
 0x2e0   :  { %830 = vadd.xlane.f32.xlu1 %v829_v60 }
 0x31c   :  { %v786_v61 = vpop.xlane.xlu1 %785 }
 0x31d   :  { %v806_v62 = vsub.f32 %v321_v35, %v786_v61 }
 0x31f   :  { %v815_v63 = vmul.f32 1.442695, %v806_v62 }
 0x320   :  { %v789_v0 = vpop.xlane.xlu0 %788 }
 0x321   :  { %1741 = vpow2.f32 %v815_v63  ;;  %v807_v1 = vsub.f32 %v397_v38, %v789_v0 }
 0x323   :  { %v817_v2 = vmul.f32 1.442695, %v807_v1 }
 0x324   :  { %v795_v3 = vpop.xlane.xlu1 %794  ;;  %v792_v4 = vpop.xlane.xlu0 %791 }
 0x325   :  { %1743 = vpow2.f32 %v817_v2  ;;  %v809_v5 = vsub.f32 %v549_v43, %v795_v3  ;;  %v808_v7 = vsub.f32 %v473_v39, %v792_v4 }
 0x327   :  { %v821_v8 = vmul.f32 1.442695, %v809_v5  ;;  %v819_v9 = vmul.f32 1.442695, %v808_v7 }
 0x328   :  { %v801_v10 = vpop.xlane.xlu1 %800  ;;  %v798_v11 = vpop.xlane.xlu0 %797 }
 0x329   :  { %1745 = vpow2.f32 %v821_v8  ;;  %v811_v12 = vsub.f32 %v701_v49, %v801_v10  ;;  %v810_v13 = vsub.f32 %v625_v44, %v798_v11 }
 0x32a   :  { %1747 = vpow2.f32 %v819_v9 }
 0x32b   :  { %v825_v14 = vmul.f32 1.442695, %v811_v12  ;;  %v823_v15 = vmul.f32 1.442695, %v810_v13 }
 0x32c   :  { %v878_v18 = vpop.permute.xlu1 %877  ;;  %v804_v19 = vpop.xlane.xlu0 %803 }
 0x32d   :  { %1749 = vpow2.f32 %v825_v14  ;;  %v812_v20 = vsub.f32 %v777_v50, %v804_v19  ;;  %1670 = vmatpush3.msra.mxu0 %v878_v18 }
 0x32e   :  { %v1742_v21 = vpop.eup %1741  ;;  %1751 = vpow2.f32 %v823_v15  ;;  %1679 = vmatprep.subr.mxu0 %v1841_v6 }
 0x32f   :  { %v827_v22 = vmul.f32 1.442695, %v812_v20  ;;  %v832_v23 = vsel %vm174_vm2, %v1742_v21, 0.0 }
 0x330   :  { %833 = vadd.xlane.f32.xlu0 %v832_v23  ;;  %v954_v24 = vpop.permute.xlu0 %953  ;;  %v1030_v37 = vpop.permute.xlu1 %1029 }
 0x331   :  { %1753 = vpow2.f32 %v827_v22  ;;  %1675 = vmatpush3.msra.mxu1 %v954_v24  ;;  %v1579_v22 = vld [vmem:[%s2067_s3] ss:$0 sm:$0xff]  ;;  %s1850_s3 = smov [#allocation7]  }
 0x332   :  { %v1744_v25 = vpop.eup %1743  ;;  %1684 = vmatprep.subr.mxu1 %v1841_v6  ;;  %s1539_s9 = sshll.u32 %s1850_s3, 4  ;;  %s1540_s9 = int_to_ptr.vmem [resolvable:$true] %s1539_s9 }
 0x333   :  { %v835_v26 = vsel %vm174_vm2, %v1744_v25, 0.0  ;;  %s1811_s10 = scalar_lea.vmem %s1540_s9, 256  ;;  %p1816_p11 = scmp.lt.s32.totalorder %s1540_s9, %s1540_s9 }
 0x334   :  { %836 = vadd.xlane.f32.xlu1 %v835_v26  ;;  %v1106_v38 = vpop.permute.xlu1 %1105  ;;  %p1812_p10 = scmp.ne.s32.totalorder %s1540_s9, %s1811_s10  ;;  %p1817_p12 = scmp.lt.s32.totalorder %s1811_s10, %s1811_s10 }
 0x336   :  { %v1746_v27 = vpop.eup %1745  ;;  %p1818_p13 = por %p1817_p12, %p1816_p11 }
 0x337   :  { %v1748_v28 = vpop.eup %1747  ;;  %v841_v29 = vsel %vm174_vm2, %v1746_v27, 0.0 }
 0x338   :  { %842 = vadd.xlane.f32.xlu1 %v841_v29  ;;  %v838_v30 = vsel %vm174_vm2, %v1748_v28, 0.0  ;;  %v1258_v39 = vpop.permute.xlu1 %1257  ;;  %p1819_p0 = pnand %p1818_p13, %p1812_p10 }
 0x339   :  { %839 = vadd.xlane.f32.xlu0 %v838_v30 }
 0x33a   :  { %v1750_v31 = vpop.eup %1749 }
 0x33b   :  { %v2005_v32 = vpop.eup %1751  ;;  %v847_v33 = vsel %vm174_vm2, %v1750_v31, 0.0 }
 0x33c   :  { %848 = vadd.xlane.f32.xlu1 %v847_v33  ;;  %v844_v34 = vsel %vm174_vm2, %v2005_v32, 0.0 }
 0x33d   :  { %845 = vadd.xlane.f32.xlu0 %v844_v34 }
 0x33e   :  { %v2010_v35 = vpop.eup %1753 }
 0x33f   :  { %v850_v36 = vsel %vm174_vm2, %v2010_v35, 0.0 }
 0x341   :  { %851 = vadd.xlane.f32.xlu0 %v850_v36 }
 0x34d   :  { %1409 = vrot.lane.b32.xlu1 %v1931_v17, %s1847_s2  ;;  %v1182_v17 = vpop.permute.xlu0 %1181 }
 0x357   :  { %1333 = vrot.lane.b32.xlu0 %v1928_v16, %s1847_s2 }
 0x369   :  { %v831_v40 = vpop.xlane.xlu1 %830 }
 0x36a   :  { %1755 = vrcp.f32 %v831_v40 }
 0x377   :  { %v1756_v41 = vpop.eup %1755 }
 0x378   :  { %v869_v42 = vmul.f32 %v1756_v41, %v1995_v59 }
 0x37a   :  { %1672 = vmatmul.mubr.msk.f32.vlgmr.msra.gmra.mxu0 %vm174_vm2, %v869_v42 }
 0x37b   :  { %1680 = vmatpush3.msra.mxu0 %v1030_v37  ;;  %1681 = vmatprep.mubr.msk.f32.mxu0 %vm1844_vm1, %v1841_v6 }
 0x37c   :  { %1689 = vmatprep.subr.mxu0 %v1841_v6 }
 0x3b9   :  { %v834_v43 = vpop.xlane.xlu0 %833 }
 0x3ba   :  { %1757 = vrcp.f32 %v834_v43 }
 0x3bd   :  { %v837_v16 = vpop.xlane.xlu1 %836 }
 0x3be   :  { %1759 = vrcp.f32 %v837_v16 }
 0x3c1   :  { %v843_v44 = vpop.xlane.xlu1 %842 }
 0x3c2   :  { %1761 = vrcp.f32 %v843_v44  ;;  %v840_v45 = vpop.xlane.xlu0 %839 }
 0x3c3   :  { %1763 = vrcp.f32 %v840_v45 }
 0x3c5   :  { %v849_v46 = vpop.xlane.xlu1 %848 }
 0x3c6   :  { %1765 = vrcp.f32 %v849_v46  ;;  %v846_v47 = vpop.xlane.xlu0 %845 }
 0x3c7   :  { %v1758_v48 = vpop.eup %1757  ;;  %1767 = vrcp.f32 %v846_v47 }
 0x3c8   :  { %v870_v49 = vmul.f32 %v1758_v48, %v1742_v21 }
 0x3c9   :  { %v1410_v62 = vpop.permute.xlu1 %1409 }
 0x3ca   :  { %v852_v50 = vpop.xlane.xlu0 %851  ;;  %1677 = vmatmul.mubr.msk.f32.vlgmr.msra.gmra.mxu1 %vm174_vm2, %v870_v49 }
 0x3cb   :  { %v1760_v51 = vpop.eup %1759  ;;  %1769 = vrcp.f32 %v852_v50  ;;  %1685 = vmatpush3.msra.mxu1 %v1106_v38  ;;  %1686 = vmatprep.mubr.msk.f32.mxu1 %vm1844_vm1, %v1841_v6 }
 0x3cc   :  { %v871_v52 = vmul.f32 %v1760_v51, %v1744_v25  ;;  %1694 = vmatprep.subr.mxu1 %v1841_v6 }
 0x3ce   :  { %1682 = vmatmul.mubr.msk.f32.vlgmr.msra.gmra.mxu0 %vm174_vm2, %v871_v52  ;;  %v1334_v57 = vpop.permute.xlu0 %1333 }
 0x3cf   :  { %v1762_v53 = vpop.eup %1761  ;;  %1690 = vmatpush3.msra.mxu0 %v1182_v17  ;;  %1691 = vmatprep.mubr.msk.f32.mxu0 %vm1844_vm1, %v1841_v6 }
 0x3d0   :  { %v1764_v54 = vpop.eup %1763  ;;  %1699 = vmatprep.subr.mxu0 %v1841_v6  ;;  %v873_v55 = vmul.f32 %v1762_v53, %v1746_v27 }
 0x3d1   :  { %v872_v56 = vmul.f32 %v1764_v54, %v1748_v28 }
 0x3d2   :  { %1692 = vmatmul.mubr.msk.f32.vlgmr.msra.gmra.mxu0 %vm174_vm2, %v873_v55 }
 0x3d3   :  { %v1766_v58 = vpop.eup %1765  ;;  %1687 = vmatmul.mubr.msk.f32.vlgmr.msra.gmra.mxu1 %vm174_vm2, %v872_v56  ;;  %1700 = vmatpush3.msra.mxu0 %v1334_v57 }
 0x3d4   :  { %v1768_v59 = vpop.eup %1767  ;;  %1695 = vmatpush3.msra.mxu1 %v1258_v39  ;;  %1696 = vmatprep.mubr.msk.f32.mxu1 %vm1844_vm1, %v1841_v6  ;;  %v875_v60 = vmul.f32 %v1766_v58, %v1750_v31 }
 0x3d5   :  { %1701 = vmatprep.mubr.msk.f32.mxu0 %vm1844_vm1, %v1841_v6  ;;  %1704 = vmatprep.subr.mxu1 %v1841_v6  ;;  %v874_v61 = vmul.f32 %v1768_v59, %v2005_v32 }
 0x3d6   :  { %1702 = vmatmul.mubr.msk.f32.vlgmr.msra.gmra.mxu0 %vm174_vm2, %v875_v60 }
 0x3d7   :  { %1697 = vmatmul.mubr.msk.f32.vlgmr.msra.gmra.mxu1 %vm174_vm2, %v874_v61 }
 0x3d8   :  { %v1770_v63 = vpop.eup %1769  ;;  %1705 = vmatpush3.msra.mxu1 %v1410_v62  ;;  %1706 = vmatprep.mubr.msk.f32.mxu1 %vm1844_vm1, %v1841_v6 }
 0x3d9   :  { %v876_v0 = vmul.f32 %v1770_v63, %v2010_v35 }
 0x3db   :  { %1707 = vmatmul.mubr.msk.f32.vlgmr.msra.gmra.mxu1 %vm174_vm2, %v876_v0 }
 0x43a   :  { %v949_v1 = vpop.f32.mrf.mxu0 }
 0x43c   :  { %v1673_v2 = vpop.f32.mrf.mxu0 }
 0x48a   :  { %v1025_v3 = vpop.f32.mrf.mxu1 }
 0x48b   :  { %1486 = vrot.lane.b32.xlu0 %v1025_v3, %s1839_s19 }
 0x48c   :  { %v1678_v4 = vpop.f32.mrf.mxu1 }
 0x48e   :  { %v1101_v5 = vpop.f32.mrf.mxu0 }
 0x48f   :  { %1490 = vrot.lane.b32.xlu0 %v1101_v5, %s1848_s5 }
 0x490   :  { %v1683_v7 = vpop.f32.mrf.mxu0 }
 0x492   :  { %v1253_v8 = vpop.f32.mrf.mxu0 }
 0x493   :  { %v1177_v9 = vpop.f32.mrf.mxu1 }
 0x494   :  { %1494 = vrot.lane.b32.xlu0 %v1177_v9, %s1849_s6  ;;  %v1693_v10 = vpop.f32.mrf.mxu0 }
 0x495   :  { %v1688_v6 = vpop.f32.mrf.mxu1 }
 0x496   :  { %v1405_v11 = vpop.f32.mrf.mxu0 }
 0x497   :  { %v1329_v12 = vpop.f32.mrf.mxu1 }
 0x498   :  { %1503 = vrot.lane.b32.xlu1 %v1329_v12, %s1839_s19  ;;  %v1703_v13 = vpop.f32.mrf.mxu0 }
 0x499   :  { %v1698_v14 = vpop.f32.mrf.mxu1 }
 0x49b   :  { %v1481_v15 = vpop.f32.mrf.mxu1 }
 0x49c   :  { %1507 = vrot.lane.b32.xlu1 %v1405_v11, %s1848_s5 }
 0x49d   :  { %v1708_v18 = vpop.f32.mrf.mxu1 }
 0x4a0   :  { %1511 = vrot.lane.b32.xlu1 %v1481_v15, %s1849_s6 }
 0x4fd   :  { %v1487_v19 = vpop.permute.xlu0 %1486 }
 0x4fe   :  { %v1497_v21 = vsel %vm174_vm2, %v949_v1, %v1487_v19 }
 0x501   :  { %v1491_v20 = vpop.permute.xlu0 %1490 }
 0x502   :  { %v1499_v23 = vsel %vm1498_vm3, %v1497_v21, %v1491_v20 }
 0x506   :  { %v1495_v24 = vpop.permute.xlu0 %1494 }
 0x507   :  { %v1501_v25 = vsel %vm1500_vm4, %v1499_v23, %v1495_v24 }
 0x508   :  { %v1523_v26 = vadd.f32 %v1579_v22, %v1501_v25 }
 0x50a   :  { %v1525_v27 = vmul.f32 10000.0, %v1523_v26  ;;  %v1504_v28 = vpop.permute.xlu1 %1503 }
 0x50b   :  { %v1514_v35 = vsel %vm174_vm2, %v1253_v8, %v1504_v28 }
 0x50c   :  { %v1711_v29 = vcvt.f32.s32 %v1525_v27  ;;  %v1709_v32 = vand.u32 2147483647, %v1525_v27  ;;  %v1714_v34 = vand.u32 2147483648, %v1525_v27 }
 0x50e   :  { %v1712_v30 = vcvt.s32.f32 %v1711_v29  ;;  %v1508_v31 = vpop.permute.xlu1 %1507  ;;  %vm1710_vm5 = vcmp.lt.f32.partialorder %v1709_v32, 8388608.0 }
 0x50f   :  { %v1515_v36 = vsel %vm1498_vm3, %v1514_v35, %v1508_v31 }
 0x510   :  { %v1713_v33 = vand.u32 2147483647, %v1712_v30 }
 0x512   :  { %v1512_v37 = vpop.permute.xlu1 %1511  ;;  %v1715_v38 = vor.u32 %v1714_v34, %v1713_v33 }
 0x513   :  { %v1516_v39 = vsel %vm1500_vm4, %v1515_v36, %v1512_v37 }
 0x514   :  { %v1524_v40 = vadd.f32 %v1579_v22, %v1516_v39  ;;  %v1716_v41 = vsel %vm1710_vm5, %v1715_v38, %v1525_v27 }
 0x515   :  { %v1530_v42 = vmul.f32 0.0001, %v1716_v41 }
 0x516   :  { %v1526_v17 = vmul.f32 10000.0, %v1524_v40 }
 0x517   :  { %1532 = vst.msk [vmem:[#allocation7] sm:$0xff] %vm54_vm0, %v1530_v42 }
 0x518   :  { %v1719_v43 = vcvt.f32.s32 %v1526_v17  ;;  %v1717_v44 = vand.u32 2147483647, %v1526_v17  ;;  %v1722_v46 = vand.u32 2147483648, %v1526_v17 }
 0x51a   :  { %v1720_v16 = vcvt.s32.f32 %v1719_v43  ;;  %vm1718_vm6 = vcmp.lt.f32.partialorder %v1717_v44, 8388608.0 }
 0x51c   :  { %v1721_v45 = vand.u32 2147483647, %v1720_v16 }
 0x51e   :  { %v1723_v47 = vor.u32 %v1722_v46, %v1721_v45 }
 0x520   :  { %v1724_v48 = vsel %vm1718_vm6, %v1723_v47, %v1526_v17 }
 0x521   :  { %v1531_v49 = vmul.f32 0.0001, %v1724_v48 }
 0x523   :  { %1533 = vst.msk [vmem:[#allocation7 + $0x8] sm:$0xff] %vm54_vm0, %v1531_v49 }
 0x524   :  { %1822 = shalt.err (!%p1819_p0)
}
 0x525   :  { %1545 = dma.vmem_to_hbm [thread:$0]  %s1540_s9, 256, %s2068_s4, [#allocation4], %s1838_s18, %s1838_s18, %s1839_s19  }
 0x526   :  { %1835 = dma.done.wait [#allocation4], 256  }
 0x527   :  { %1836 = vsyncadd [#allocation4], 4294967040 }
 0x528   :  { %1549 = vsyncpa [#allocation3], 1 }
 0x529   :  { %1550 = vsyncpa [#allocation6], 1 }
 0x52a   :  { %1551 = vsyncpa [#allocation4], 1 }

</bundles_post_ra>
